<compile_context>
chip_gen: v6e
topology: v6e:2x2x1
jax: 0.10.0
libtpu: 0.0.40
codegen_flags: <defaults>
</compile_context>

<pallas_src>
import jax
import jax.numpy as jnp
from jax import lax
from jax.experimental import pallas as pl
from jax.experimental.pallas import tpu as pltpu


def _round_up(x, m):
    return (x + m - 1) // m * m


# Tap order t = kh*3 + kw  ->  (phase, dh, dw).
# Phases: 0 = even-row/even-col, 1 = even/odd, 2 = odd/even, 3 = odd/odd.
# Output pixel (oh, ow) reads padded input (2*oh + kh, 2*ow + kw); even taps
# live in the even phase at index oh (+1 for kh==2), odd taps in the odd
# phase at index oh -- so every tap is a (dh, dw) in {0,1}^2 shifted window.
_TAPS = (
    (0, 0, 0), (1, 0, 0), (0, 0, 1),   # kh = 0 : kw = 0, 1, 2
    (2, 0, 0), (3, 0, 0), (2, 0, 1),   # kh = 1
    (0, 1, 0), (1, 1, 0), (0, 1, 1),   # kh = 2
)


def _repvgg_down_kernel(xee_ref, xeo_ref, xoe_ref, xoo_ref, w_ref, b_ref,
                        o_ref):
    """One batch element of the fused downsample block.

    xee/xeo/xoe/xoo: stride-2 phases of the zero-padded NHWC input (bf16):
        ee (1, Ho+1, Wo+1, Cin)   eo (1, Ho+1, Wo, Cin)
        oe (1, Ho,   Wo+1, Cin)   oo (1, Ho,   Wo, Cin)
    w_ref: (9, Cin, Coutp) bf16 -- BN-folded 3x3 weights with the 1x1 branch
           folded into the centre tap (t=4); Cout zero-padded to Coutp.
    b_ref: (1, Coutp) f32 combined folded-BN bias.
    o_ref: (1, Ho*Wo, Coutp) f32.
    """
    _, ho, wo, cin = xoo_ref.shape

    # Upcast each phase once to f32: the (Ho, Wo, Cin) -> (Ho*Wo, Cin) collapse
    # below is a layout-preserving reshape for f32 8-sublane tiles (Wo % 8 ==
    # 0 by construction) but not for packed bf16.  MXU operands are cast back
    # to bf16 per tap; the f32<->bf16 casts are cheap VALU work.
    phases = (xee_ref[0].astype(jnp.float32),
              xeo_ref[0].astype(jnp.float32),
              xoe_ref[0].astype(jnp.float32),
              xoo_ref[0].astype(jnp.float32))

    acc = None
    for t, (p, dh, dw) in enumerate(_TAPS):
        win = phases[p][dh:dh + ho, dw:dw + wo, :]          # (Ho, Wo, Cin) f32
        lhs = win.reshape(ho * wo, cin).astype(jnp.bfloat16)
        part = jnp.dot(lhs, w_ref[t], preferred_element_type=jnp.float32)
        acc = part if acc is None else acc + part

    y = acc + b_ref[...]                                    # f32 epilogue
    o_ref[0] = jnp.maximum(y, 0.0).astype(o_ref.dtype)


def downsample_repvgg_block(x_nchw, params, *, stride=2):
    """Fused forward. x_nchw: (N, Cin, H, W) f32 -> (N, Cout, Ho, Wo) f32."""
    assert stride == 2, "kernel is specialised to the stride-2 downsample"
    w3, w1, g3, be3, m3, v3, g1, be1, m1, v1 = params
    eps = 1e-5

    n, cin, h, w = x_nchw.shape
    cout = w3.shape[0]
    ho = (h + 2 - 3) // stride + 1
    wo = (w + 2 - 3) // stride + 1
    wo_p = _round_up(wo, 8)          # sublane-aligned spatial collapse
    coutp = _round_up(cout, 128)     # lane-dense output stores

    # ---- glue: NCHW -> NHWC, zero-pad, bf16 cast, stride-2 phase split ----
    # (~1x input HBM traffic; extra right columns, if any, are zeros and the
    #  corresponding outputs are sliced off below.)
    x_nhwc = jnp.transpose(x_nchw, (0, 2, 3, 1))
    pad_r = max(1, 2 * wo_p + 1 - (w + 1))
    xpad = jnp.pad(x_nhwc, ((0, 0), (1, 1), (1, pad_r), (0, 0)))
    xpad = xpad.astype(jnp.bfloat16)
    xee = xpad[:, 0:2 * ho + 1:2, 0:2 * wo_p + 1:2, :]   # (N, Ho+1, Wo+1, Cin)
    xeo = xpad[:, 0:2 * ho + 1:2, 1:2 * wo_p:2, :]       # (N, Ho+1, Wo,   Cin)
    xoe = xpad[:, 1:2 * ho:2, 0:2 * wo_p + 1:2, :]       # (N, Ho,   Wo+1, Cin)
    xoo = xpad[:, 1:2 * ho:2, 1:2 * wo_p:2, :]           # (N, Ho,   Wo,   Cin)

    # ---- glue: fold eval-mode BN + the 1x1 branch into one weight/bias ----
    inv3 = g3 / jnp.sqrt(v3 + eps)
    inv1 = g1 / jnp.sqrt(v1 + eps)
    w3_t = jnp.transpose(w3, (2, 3, 1, 0)).reshape(9, cin, cout)  # t = kh*3+kw
    wfold = w3_t * inv3[None, None, :]
    w1_t = jnp.transpose(w1[:, :, 0, 0], (1, 0)) * inv1[None, :]  # (Cin, Cout)
    wfold = wfold.at[4].add(w1_t)                                  # centre tap
    bias = (be3 - m3 * inv3) + (be1 - m1 * inv1)
    wfold = jnp.pad(wfold, ((0, 0), (0, 0), (0, coutp - cout)))
    wfold = wfold.astype(jnp.bfloat16)
    bias = jnp.pad(bias, (0, coutp - cout)).reshape(1, coutp)
    bias = bias.astype(jnp.float32)

    def _phase_spec(arr):
        return pl.BlockSpec((1,) + arr.shape[1:], lambda i: (i, 0, 0, 0))

    in_bytes = 2 * (xee.size + xeo.size + xoe.size + xoo.size + wfold.size)
    out_bytes = 4 * (n * ho * wo_p * coutp + bias.size)
    cost = pl.CostEstimate(
        flops=2 * n * ho * wo_p * 9 * cin * coutp,
        transcendentals=0,
        bytes_accessed=in_bytes + out_bytes)

    out_flat = pl.pallas_call(
        _repvgg_down_kernel,
        out_shape=jax.ShapeDtypeStruct((n, ho * wo_p, coutp), jnp.float32),
        grid=(n,),
        in_specs=[
            _phase_spec(xee),
            _phase_spec(xeo),
            _phase_spec(xoe),
            _phase_spec(xoo),
            pl.BlockSpec((9, cin, coutp), lambda i: (0, 0, 0)),
            pl.BlockSpec((1, coutp), lambda i: (0, 0)),
        ],
        out_specs=pl.BlockSpec((1, ho * wo_p, coutp), lambda i: (i, 0, 0)),
        compiler_params=pltpu.CompilerParams(
            dimension_semantics=("parallel",),     # shards N across TCs (v7x)
            vmem_limit_bytes=32 * 1024 * 1024),    # explicit, fits all gens
        cost_estimate=cost,
    )(xee, xeo, xoe, xoo, wfold, bias)

    out_nhwc = out_flat.reshape(n, ho, wo_p, coutp)[:, :, :wo, :cout]
    return jnp.transpose(out_nhwc, (0, 3, 1, 2))               # back to NCHW


def _reference(x_nchw, params, *, stride=2):
    """Pure-JAX (f32) reference mirroring the PyTorch eval-mode forward."""
    w3, w1, g3, be3, m3, v3, g1, be1, m1, v1 = params
    eps = 1e-5
    x = jnp.transpose(x_nchw, (0, 2, 3, 1))
    w3_hwio = jnp.transpose(w3, (2, 3, 1, 0))
    w1_hwio = jnp.transpose(w1, (2, 3, 1, 0))
    dn = ("NHWC", "HWIO", "NHWC")
    c3 = lax.conv_general_dilated(x, w3_hwio, (stride, stride),
                                  ((1, 1), (1, 1)), dimension_numbers=dn)
    c1 = lax.conv_general_dilated(x, w1_hwio, (stride, stride),
                                  ((0, 0), (0, 0)), dimension_numbers=dn)
    y3 = (c3 - m3) / jnp.sqrt(v3 + eps) * g3 + be3
    y1 = (c1 - m1) / jnp.sqrt(v1 + eps) * g1 + be1
    y = jnp.maximum(y3 + y1, 0.0)
    return jnp.transpose(y, (0, 3, 1, 2))


def _init_params(key, cin, cout):
    ks = jax.random.split(key, 10)
    w3 = 0.1 * jax.random.normal(ks[0], (cout, cin, 3, 3), jnp.float32)
    w1 = 0.1 * jax.random.normal(ks[1], (cout, cin, 1, 1), jnp.float32)
    g3 = jax.random.uniform(ks[2], (cout,), jnp.float32, 0.5, 1.5)
    be3 = 0.1 * jax.random.normal(ks[3], (cout,), jnp.float32)
    m3 = 0.1 * jax.random.normal(ks[4], (cout,), jnp.float32)
    v3 = jax.random.uniform(ks[5], (cout,), jnp.float32, 0.5, 1.5)
    g1 = jax.random.uniform(ks[6], (cout,), jnp.float32, 0.5, 1.5)
    be1 = 0.1 * jax.random.normal(ks[7], (cout,), jnp.float32)
    m1 = 0.1 * jax.random.normal(ks[8], (cout,), jnp.float32)
    v1 = jax.random.uniform(ks[9], (cout,), jnp.float32, 0.5, 1.5)
    return (w3, w1, g3, be3, m3, v3, g1, be1, m1, v1)


if __name__ == "__main__":
    key = jax.random.PRNGKey(0)
    k_x, k_p = jax.random.split(key)

    N, CIN, COUT, H, W = 2, 4, 8, 16, 16
    x = jax.random.normal(k_x, (N, CIN, H, W), jnp.float32)   # NCHW, like torch
    params = _init_params(k_p, CIN, COUT)

    out = jax.block_until_ready(downsample_repvgg_block(x, params))
    ref = jax.block_until_ready(_reference(x, params))

    assert out.shape == (N, COUT, H // 2, W // 2), out.shape
    # bf16 MXU operands -> tolerance loosened vs. the f32 reference.
    assert jnp.allclose(out, ref, atol=5e-2, rtol=5e-2), float(
        jnp.max(jnp.abs(out - ref)))
    print("KERNEL_OK")
</pallas_src>

<mosaic_0001>
module attributes {stable_mosaic.version = 11 : i64} {
  func.func @_repvgg_down_kernel(%arg0: i32, %arg1: memref<1x9x9x4xbf16, #tpu.memory_space<vmem>>, %arg2: memref<1x9x8x4xbf16, #tpu.memory_space<vmem>>, %arg3: memref<1x8x9x4xbf16, #tpu.memory_space<vmem>>, %arg4: memref<1x8x8x4xbf16, #tpu.memory_space<vmem>>, %arg5: memref<9x4x128xbf16, #tpu.memory_space<vmem>>, %arg6: memref<1x128xf32, #tpu.memory_space<vmem>>, %arg7: memref<1x64x128xf32, #tpu.memory_space<vmem>>) attributes {dimension_semantics = [#tpu.dimension_semantics<parallel>], iteration_bounds = array<i64: 2>, scalar_prefetch = 0 : i64, scratch_operands = 0 : i64, tpu.core_type = #tpu.core_type<tc>, window_params = [{transform_indices = @transform_0, window_bounds = array<i64: 1, 9, 9, 4>}, {transform_indices = @transform_1, window_bounds = array<i64: 1, 9, 8, 4>}, {transform_indices = @transform_2, window_bounds = array<i64: 1, 8, 9, 4>}, {transform_indices = @transform_3, window_bounds = array<i64: 1, 8, 8, 4>}, {pipeline_mode = #tpu.pipeline_mode<synchronous>, transform_indices = @transform_4, window_bounds = array<i64: 9, 4, 128>}, {pipeline_mode = #tpu.pipeline_mode<synchronous>, transform_indices = @transform_5, window_bounds = array<i64: 1, 128>}, {transform_indices = @transform_6, window_bounds = array<i64: 1, 64, 128>}]} {
    %c0 = arith.constant 0 : index
    %c0_0 = arith.constant 0 : index
    %c0_1 = arith.constant 0 : index
    %c0_2 = arith.constant 0 : index
    %0 = vector.load %arg1[%c0, %c0_0, %c0_1, %c0_2] : memref<1x9x9x4xbf16, #tpu.memory_space<vmem>>, vector<1x9x9x4xbf16>
    %1 = vector.shape_cast %0 : vector<1x9x9x4xbf16> to vector<9x9x4xbf16>
    %2 = arith.extf %1 : vector<9x9x4xbf16> to vector<9x9x4xf32>
    %c0_3 = arith.constant 0 : index
    %c0_4 = arith.constant 0 : index
    %c0_5 = arith.constant 0 : index
    %c0_6 = arith.constant 0 : index
    %3 = vector.load %arg2[%c0_3, %c0_4, %c0_5, %c0_6] : memref<1x9x8x4xbf16, #tpu.memory_space<vmem>>, vector<1x9x8x4xbf16>
    %4 = vector.shape_cast %3 : vector<1x9x8x4xbf16> to vector<9x8x4xbf16>
    %5 = arith.extf %4 : vector<9x8x4xbf16> to vector<9x8x4xf32>
    %c0_7 = arith.constant 0 : index
    %c0_8 = arith.constant 0 : index
    %c0_9 = arith.constant 0 : index
    %c0_10 = arith.constant 0 : index
    %6 = vector.load %arg3[%c0_7, %c0_8, %c0_9, %c0_10] : memref<1x8x9x4xbf16, #tpu.memory_space<vmem>>, vector<1x8x9x4xbf16>
    %7 = vector.shape_cast %6 : vector<1x8x9x4xbf16> to vector<8x9x4xbf16>
    %8 = arith.extf %7 : vector<8x9x4xbf16> to vector<8x9x4xf32>
    %c0_11 = arith.constant 0 : index
    %c0_12 = arith.constant 0 : index
    %c0_13 = arith.constant 0 : index
    %c0_14 = arith.constant 0 : index
    %9 = vector.load %arg4[%c0_11, %c0_12, %c0_13, %c0_14] : memref<1x8x8x4xbf16, #tpu.memory_space<vmem>>, vector<1x8x8x4xbf16>
    %10 = vector.shape_cast %9 : vector<1x8x8x4xbf16> to vector<8x8x4xbf16>
    %11 = arith.extf %10 : vector<8x8x4xbf16> to vector<8x8x4xf32>
    %12 = vector.extract_strided_slice %2 {offsets = [0, 0, 0], sizes = [8, 8, 4], strides = [1, 1, 1]} : vector<9x9x4xf32> to vector<8x8x4xf32>
    %13 = vector.shape_cast %12 : vector<8x8x4xf32> to vector<64x4xf32>
    %14 = arith.truncf %13 : vector<64x4xf32> to vector<64x4xbf16>
    %c0_15 = arith.constant 0 : index
    %c0_16 = arith.constant 0 : index
    %c0_17 = arith.constant 0 : index
    %15 = vector.load %arg5[%c0_15, %c0_16, %c0_17] : memref<9x4x128xbf16, #tpu.memory_space<vmem>>, vector<1x4x128xbf16>
    %16 = vector.shape_cast %15 : vector<1x4x128xbf16> to vector<4x128xbf16>
    %cst = arith.constant dense<0.000000e+00> : vector<64x128xf32>
    %17 = tpu.matmul %14, %16, %cst {dimension_numbers = #tpu.dot_dimension_numbers<[1], [0], [0], [1], [0, 0, 1, 1], [], []>} : vector<64x4xbf16>, vector<4x128xbf16>, vector<64x128xf32> -> vector<64x128xf32>
    %18 = vector.extract_strided_slice %5 {offsets = [0, 0, 0], sizes = [8, 8, 4], strides = [1, 1, 1]} : vector<9x8x4xf32> to vector<8x8x4xf32>
    %19 = vector.shape_cast %18 : vector<8x8x4xf32> to vector<64x4xf32>
    %20 = arith.truncf %19 : vector<64x4xf32> to vector<64x4xbf16>
    %c1 = arith.constant 1 : index
    %c0_18 = arith.constant 0 : index
    %c0_19 = arith.constant 0 : index
    %21 = vector.load %arg5[%c1, %c0_18, %c0_19] : memref<9x4x128xbf16, #tpu.memory_space<vmem>>, vector<1x4x128xbf16>
    %22 = vector.shape_cast %21 : vector<1x4x128xbf16> to vector<4x128xbf16>
    %cst_20 = arith.constant dense<0.000000e+00> : vector<64x128xf32>
    %23 = tpu.matmul %20, %22, %cst_20 {dimension_numbers = #tpu.dot_dimension_numbers<[1], [0], [0], [1], [0, 0, 1, 1], [], []>} : vector<64x4xbf16>, vector<4x128xbf16>, vector<64x128xf32> -> vector<64x128xf32>
    %24 = arith.addf %17, %23 : vector<64x128xf32>
    %25 = vector.extract_strided_slice %2 {offsets = [0, 1, 0], sizes = [8, 8, 4], strides = [1, 1, 1]} : vector<9x9x4xf32> to vector<8x8x4xf32>
    %26 = vector.shape_cast %25 : vector<8x8x4xf32> to vector<64x4xf32>
    %27 = arith.truncf %26 : vector<64x4xf32> to vector<64x4xbf16>
    %c2 = arith.constant 2 : index
    %c0_21 = arith.constant 0 : index
    %c0_22 = arith.constant 0 : index
    %28 = vector.load %arg5[%c2, %c0_21, %c0_22] : memref<9x4x128xbf16, #tpu.memory_space<vmem>>, vector<1x4x128xbf16>
    %29 = vector.shape_cast %28 : vector<1x4x128xbf16> to vector<4x128xbf16>
    %cst_23 = arith.constant dense<0.000000e+00> : vector<64x128xf32>
    %30 = tpu.matmul %27, %29, %cst_23 {dimension_numbers = #tpu.dot_dimension_numbers<[1], [0], [0], [1], [0, 0, 1, 1], [], []>} : vector<64x4xbf16>, vector<4x128xbf16>, vector<64x128xf32> -> vector<64x128xf32>
    %31 = arith.addf %24, %30 : vector<64x128xf32>
    %32 = vector.extract_strided_slice %8 {offsets = [0, 0, 0], sizes = [8, 8, 4], strides = [1, 1, 1]} : vector<8x9x4xf32> to vector<8x8x4xf32>
    %33 = vector.shape_cast %32 : vector<8x8x4xf32> to vector<64x4xf32>
    %34 = arith.truncf %33 : vector<64x4xf32> to vector<64x4xbf16>
    %c3 = arith.constant 3 : index
    %c0_24 = arith.constant 0 : index
    %c0_25 = arith.constant 0 : index
    %35 = vector.load %arg5[%c3, %c0_24, %c0_25] : memref<9x4x128xbf16, #tpu.memory_space<vmem>>, vector<1x4x128xbf16>
    %36 = vector.shape_cast %35 : vector<1x4x128xbf16> to vector<4x128xbf16>
    %cst_26 = arith.constant dense<0.000000e+00> : vector<64x128xf32>
    %37 = tpu.matmul %34, %36, %cst_26 {dimension_numbers = #tpu.dot_dimension_numbers<[1], [0], [0], [1], [0, 0, 1, 1], [], []>} : vector<64x4xbf16>, vector<4x128xbf16>, vector<64x128xf32> -> vector<64x128xf32>
    %38 = arith.addf %31, %37 : vector<64x128xf32>
    %39 = vector.shape_cast %11 : vector<8x8x4xf32> to vector<64x4xf32>
    %40 = arith.truncf %39 : vector<64x4xf32> to vector<64x4xbf16>
    %c4 = arith.constant 4 : index
    %c0_27 = arith.constant 0 : index
    %c0_28 = arith.constant 0 : index
    %41 = vector.load %arg5[%c4, %c0_27, %c0_28] : memref<9x4x128xbf16, #tpu.memory_space<vmem>>, vector<1x4x128xbf16>
    %42 = vector.shape_cast %41 : vector<1x4x128xbf16> to vector<4x128xbf16>
    %cst_29 = arith.constant dense<0.000000e+00> : vector<64x128xf32>
    %43 = tpu.matmul %40, %42, %cst_29 {dimension_numbers = #tpu.dot_dimension_numbers<[1], [0], [0], [1], [0, 0, 1, 1], [], []>} : vector<64x4xbf16>, vector<4x128xbf16>, vector<64x128xf32> -> vector<64x128xf32>
    %44 = arith.addf %38, %43 : vector<64x128xf32>
    %45 = vector.extract_strided_slice %8 {offsets = [0, 1, 0], sizes = [8, 8, 4], strides = [1, 1, 1]} : vector<8x9x4xf32> to vector<8x8x4xf32>
    %46 = vector.shape_cast %45 : vector<8x8x4xf32> to vector<64x4xf32>
    %47 = arith.truncf %46 : vector<64x4xf32> to vector<64x4xbf16>
    %c5 = arith.constant 5 : index
    %c0_30 = arith.constant 0 : index
    %c0_31 = arith.constant 0 : index
    %48 = vector.load %arg5[%c5, %c0_30, %c0_31] : memref<9x4x128xbf16, #tpu.memory_space<vmem>>, vector<1x4x128xbf16>
    %49 = vector.shape_cast %48 : vector<1x4x128xbf16> to vector<4x128xbf16>
    %cst_32 = arith.constant dense<0.000000e+00> : vector<64x128xf32>
    %50 = tpu.matmul %47, %49, %cst_32 {dimension_numbers = #tpu.dot_dimension_numbers<[1], [0], [0], [1], [0, 0, 1, 1], [], []>} : vector<64x4xbf16>, vector<4x128xbf16>, vector<64x128xf32> -> vector<64x128xf32>
    %51 = arith.addf %44, %50 : vector<64x128xf32>
    %52 = vector.extract_strided_slice %2 {offsets = [1, 0, 0], sizes = [8, 8, 4], strides = [1, 1, 1]} : vector<9x9x4xf32> to vector<8x8x4xf32>
    %53 = vector.shape_cast %52 : vector<8x8x4xf32> to vector<64x4xf32>
    %54 = arith.truncf %53 : vector<64x4xf32> to vector<64x4xbf16>
    %c6 = arith.constant 6 : index
    %c0_33 = arith.constant 0 : index
    %c0_34 = arith.constant 0 : index
    %55 = vector.load %arg5[%c6, %c0_33, %c0_34] : memref<9x4x128xbf16, #tpu.memory_space<vmem>>, vector<1x4x128xbf16>
    %56 = vector.shape_cast %55 : vector<1x4x128xbf16> to vector<4x128xbf16>
    %cst_35 = arith.constant dense<0.000000e+00> : vector<64x128xf32>
    %57 = tpu.matmul %54, %56, %cst_35 {dimension_numbers = #tpu.dot_dimension_numbers<[1], [0], [0], [1], [0, 0, 1, 1], [], []>} : vector<64x4xbf16>, vector<4x128xbf16>, vector<64x128xf32> -> vector<64x128xf32>
    %58 = arith.addf %51, %57 : vector<64x128xf32>
    %59 = vector.extract_strided_slice %5 {offsets = [1, 0, 0], sizes = [8, 8, 4], strides = [1, 1, 1]} : vector<9x8x4xf32> to vector<8x8x4xf32>
    %60 = vector.shape_cast %59 : vector<8x8x4xf32> to vector<64x4xf32>
    %61 = arith.truncf %60 : vector<64x4xf32> to vector<64x4xbf16>
    %c7 = arith.constant 7 : index
    %c0_36 = arith.constant 0 : index
    %c0_37 = arith.constant 0 : index
    %62 = vector.load %arg5[%c7, %c0_36, %c0_37] : memref<9x4x128xbf16, #tpu.memory_space<vmem>>, vector<1x4x128xbf16>
    %63 = vector.shape_cast %62 : vector<1x4x128xbf16> to vector<4x128xbf16>
    %cst_38 = arith.constant dense<0.000000e+00> : vector<64x128xf32>
    %64 = tpu.matmul %61, %63, %cst_38 {dimension_numbers = #tpu.dot_dimension_numbers<[1], [0], [0], [1], [0, 0, 1, 1], [], []>} : vector<64x4xbf16>, vector<4x128xbf16>, vector<64x128xf32> -> vector<64x128xf32>
    %65 = arith.addf %58, %64 : vector<64x128xf32>
    %66 = vector.extract_strided_slice %2 {offsets = [1, 1, 0], sizes = [8, 8, 4], strides = [1, 1, 1]} : vector<9x9x4xf32> to vector<8x8x4xf32>
    %67 = vector.shape_cast %66 : vector<8x8x4xf32> to vector<64x4xf32>
    %68 = arith.truncf %67 : vector<64x4xf32> to vector<64x4xbf16>
    %c8 = arith.constant 8 : index
    %c0_39 = arith.constant 0 : index
    %c0_40 = arith.constant 0 : index
    %69 = vector.load %arg5[%c8, %c0_39, %c0_40] : memref<9x4x128xbf16, #tpu.memory_space<vmem>>, vector<1x4x128xbf16>
    %70 = vector.shape_cast %69 : vector<1x4x128xbf16> to vector<4x128xbf16>
    %cst_41 = arith.constant dense<0.000000e+00> : vector<64x128xf32>
    %71 = tpu.matmul %68, %70, %cst_41 {dimension_numbers = #tpu.dot_dimension_numbers<[1], [0], [0], [1], [0, 0, 1, 1], [], []>} : vector<64x4xbf16>, vector<4x128xbf16>, vector<64x128xf32> -> vector<64x128xf32>
    %72 = arith.addf %65, %71 : vector<64x128xf32>
    %c0_42 = arith.constant 0 : index
    %c0_43 = arith.constant 0 : index
    %73 = vector.load %arg6[%c0_42, %c0_43] : memref<1x128xf32, #tpu.memory_space<vmem>>, vector<1x128xf32>
    %74 = vector.broadcast %73 : vector<1x128xf32> to vector<64x128xf32>
    %75 = arith.addf %72, %74 : vector<64x128xf32>
    %cst_44 = arith.constant 0.000000e+00 : f32
    %76 = vector.broadcast %cst_44 : f32 to vector<64x128xf32>
    %77 = arith.maximumf %75, %76 : vector<64x128xf32>
    %c0_45 = arith.constant 0 : index
    %c0_46 = arith.constant 0 : index
    %c0_47 = arith.constant 0 : index
    %78 = vector.load %arg7[%c0_45, %c0_46, %c0_47] : memref<1x64x128xf32, #tpu.memory_space<vmem>>, vector<1x64x128xf32>
    %79 = vector.shape_cast %78 : vector<1x64x128xf32> to vector<64x128xf32>
    %80 = vector.shape_cast %77 : vector<64x128xf32> to vector<1x64x128xf32>
    tpu.vector_store %arg7[%c0_45, %c0_46, %c0_47], %80 {strides = array<i32>} : memref<1x64x128xf32, #tpu.memory_space<vmem>>, vector<1x64x128xf32>,
    return
  }
  func.func @transform_0(%arg0: i32) -> (i32, i32, i32, i32) {
    %c0_i32 = arith.constant 0 : i32
    %c0_i32_0 = arith.constant 0 : i32
    %c0_i32_1 = arith.constant 0 : i32
    %c0_i32_2 = arith.constant 0 : i32
    return %arg0, %c0_i32, %c0_i32_0, %c0_i32_1 : i32, i32, i32, i32
  }
  func.func @transform_1(%arg0: i32) -> (i32, i32, i32, i32) {
    %c0_i32 = arith.constant 0 : i32
    %c0_i32_0 = arith.constant 0 : i32
    %c0_i32_1 = arith.constant 0 : i32
    %c0_i32_2 = arith.constant 0 : i32
    return %arg0, %c0_i32, %c0_i32_0, %c0_i32_1 : i32, i32, i32, i32
  }
  func.func @transform_2(%arg0: i32) -> (i32, i32, i32, i32) {
    %c0_i32 = arith.constant 0 : i32
    %c0_i32_0 = arith.constant 0 : i32
    %c0_i32_1 = arith.constant 0 : i32
    %c0_i32_2 = arith.constant 0 : i32
    return %arg0, %c0_i32, %c0_i32_0, %c0_i32_1 : i32, i32, i32, i32
  }
  func.func @transform_3(%arg0: i32) -> (i32, i32, i32, i32) {
    %c0_i32 = arith.constant 0 : i32
    %c0_i32_0 = arith.constant 0 : i32
    %c0_i32_1 = arith.constant 0 : i32
    %c0_i32_2 = arith.constant 0 : i32
    return %arg0, %c0_i32, %c0_i32_0, %c0_i32_1 : i32, i32, i32, i32
  }
  func.func @transform_4(%arg0: i32) -> (i32, i32, i32) {
    %c0_i32 = arith.constant 0 : i32
    %c0_i32_0 = arith.constant 0 : i32
    %c0_i32_1 = arith.constant 0 : i32
    %c0_i32_2 = arith.constant 0 : i32
    return %c0_i32, %c0_i32_0, %c0_i32_1 : i32, i32, i32
  }
  func.func @transform_5(%arg0: i32) -> (i32, i32) {
    %c0_i32 = arith.constant 0 : i32
    %c0_i32_0 = arith.constant 0 : i32
    %c0_i32_1 = arith.constant 0 : i32
    return %c0_i32, %c0_i32_0 : i32, i32
  }
  func.func @transform_6(%arg0: i32) -> (i32, i32, i32) {
    %c0_i32 = arith.constant 0 : i32
    %c0_i32_0 = arith.constant 0 : i32
    %c0_i32_1 = arith.constant 0 : i32
    return %arg0, %c0_i32, %c0_i32_0 : i32, i32, i32
  }
}

</mosaic_0001>

<bundles_post_ra>
// kernel: tpu_custom_call.1
= control target key start
LH: loop header
LB: loop body
LE: loop exit
PB: predicated region body
PF: predicated region fallthrough
CT: control target
= control target key end

     0   :  { %11 = vsyncpa [#allocation3], 0  ;;  %s2304_s0 = inlined_call_operand.vmem [shape: bf16[2,9,9,4], index: 0, kind: input, shape index: {}]   ;;  %s2305_s1 = inlined_call_operand.vmem [shape: bf16[2,9,8,4], index: 1, kind: input, shape index: {}]   ;;  %s2306_s2 = inlined_call_operand.vmem [shape: bf16[2,8,9,4], index: 2, kind: input, shape index: {}]   ;;  %s2307_s3 = inlined_call_operand.vmem [shape: bf16[2,8,8,4], index: 3, kind: input, shape index: {}]   ;;  %s2308_s4 = inlined_call_operand.vmem [shape: bf16[9,4,128], index: 4, kind: input, shape index: {}]   ;;  %s2309_s5 = inlined_call_operand.vmem [shape: f32[1,128], index: 5, kind: input, shape index: {}]   ;;  %s2310_s6 = inlined_call_operand.hbm [shape: f32[2,64,128], index: 6, kind: output, shape index: {}]  }
   0x1   :  { %13 = vsyncpa [#allocation3 + $0x1], 0  ;;  %s1892_s21 = smov 0   ;;  %s1894_s22 = smov 0  }
   0x2   :  { %s1896_s23 = smov 0   ;;  %s1898_s24 = smov 0  }
   0x3 LB: > { %s1913_s25 = sadd.s32 4294967295, %s1852_s24   ;;  %s1490_s26 = sadd.s32 4294967294, %s1852_s24   ;;  %s1852_s24 = sphi %s1898_s24, %s2316_s24   ;;  %s1848_s23 = sphi %s1896_s23, %s2315_s23   ;;  %s1844_s22 = sphi %s1894_s22, %s2314_s22   ;;  %s1840_s21 = sphi %s1892_s21, %s2313_s21  }
   0x4   : > { %s1917_s27 = sadd.s32 1, %s1852_s24   ;;  %s172_s28 = sadd.s32 1, %s1848_s23 }
   0x5   : > { %s169_s29 = ssub.s32 %s1852_s24, %s1917_s27  ;;  %p182_p0 = scmp.ne.s32.totalorder %s1848_s23, %s1844_s22 }
   0x6   : > { %p170_p1 = scmp.eq.s32.totalorder %s169_s29, 0  ;;  %p183_p2 = scmp.eq.s32.totalorder %s1913_s25, 1 }
   0x7   : > { %p188_p3 = scmp.ne.s32.totalorder %s1844_s22, %s1840_s21  ;;  %p189_p4 = scmp.eq.s32.totalorder %s1490_s26, 1 }
   0x8   : > { %s1928_s30 = scalar_select %p170_p1, %s1848_s23, %s172_s28  }
   0x9   : > { %p1930_p5 = por %p183_p2, %p182_p0  ;;  %p1934_p6 = por %p189_p4, %p188_p3 }
   0xa   : > { %p1493_p7 = scmp.ge.s32.totalorder %s1852_s24, 1  ;;  %p245_p8 = scmp.lt.s32.totalorder %s1852_s24, 3 }
   0xc   : > { %p246_p9 = pnand %p1493_p7, %p245_p8 }
   0xd   : > { %p290_p10 = scmp.lt.s32.totalorder (!%p246_p9), %s1913_s25, 1  ;;  %s1577_s20 = sshll.u32 (!%p246_p9), %s1913_s25, 10 }
   0xe   : > { %249 = sbr.rel (%p246_p9) target bundleno = 315 (0x13b), region = 44 }
  0x13   : > { %v1509_v0 = vld [vmem:[%s2308_s4 + $0x2] sm:$0x3]  ;;  %vm437_vm0 = vcmask 1041408   ;;  %v417_v2 = vld [vmem:[%s2308_s4] sm:$0x3]  ;;  %s1954_s15 = scalar_select %p290_p10, %s1913_s25, 1 }
  0x14   : > { %1716 = vmatprep.subr.msk.bf16.mxu1 %vm437_vm0, %v1509_v0  ;;  %1715 = vmatprep.subr.msk.bf16.mxu0 %vm437_vm0, %v1509_v0  ;;  %v439_v1 = vsel %vm437_vm0, %v1509_v0, 0  ;;  %v1518_v3 = vld [vmem:[%s2308_s4 + $0x4] sm:$0x3]  ;;  %v1527_v4 = vld [vmem:[%s2308_s4 + $0x6] sm:$0x3]  ;;  %vm424_vm1 = vcmask 31744  }
  0x15   : > { %1714 = vmatpush3.bf16.msra.mxu1 %v439_v1  ;;  %1624 = vmatpush3.bf16.msra.mxu0 %v439_v1  ;;  %s1725_s18 = smul.u32 72, %s1954_s15  ;;  %v519_v5 = vsel %vm437_vm0, %v417_v2, 0  ;;  %v654_v6 = vsel %vm437_vm0, %v1518_v3, 0  ;;  %vm602_vm2 = vcmask 1046528   ;;  %v1971_v7 = vsel %vm437_vm0, %v1527_v4, 0  ;;  %s1576_s13 = sshll.u32 %s1954_s15, 5 }
  0x16   : > { %1717 = vmatprep.subr.msk.bf16.mxu1 %vm437_vm0, %v417_v2  ;;  %1718 = vmatprep.subr.msk.bf16.mxu0 %vm437_vm0, %v1518_v3  ;;  %s1726_s19 = smul.u32 36, %s1954_s15  ;;  %v1536_v17 = vld [vmem:[%s2308_s4 + $0x8] sm:$0x3]  ;;  %s1575_s14 = sshll.u32 %s1954_s15, 6 }
  0x17   : > { %s1966_s28 = scalar_lea.vmem %s2304_s0, %s1725_s18  ;;  %v842_v41 = vsel %vm437_vm0, %v1536_v17, 0  ;;  %s2060_s18 = scalar_lea.vmem %s2307_s3, %s1576_s13 }
  0x18   : > { %s1976_s10 = scalar_lea.vmem %s2305_s1, %s1726_s19  ;;  %v311_v8 = vld [vmem:[%s1966_s28] sm:$0xf]  ;;  %v1980_v9 = vld [vmem:[%s1966_s28 + $0x8] sm:$0xf]  ;;  %v312_v10 = vld [vmem:[%s1966_s28 + $0x4] sm:$0x1]  ;;  %s2083_s26 = scalar_lea.vmem %s2306_s2, %s1575_s14 }
  0x19   : > { %v347_v11 = vld [vmem:[%s1976_s10] sm:$0xf]  ;;  %v1985_v12 = vld [vmem:[%s1976_s10 + $0x4] sm:$0xf]  ;;  %v1988_v13 = vld [vmem:[%s1976_s10 + $0x8] sm:$0xf]  ;;  %v329_v14 = vunpack.c.l.bf16 %v311_v8  ;;  %v331_v15 = vunpack.c.l.bf16 %v1980_v9  ;;  %v330_v16 = vunpack.c.l.bf16 %v312_v10  ;;  %v1501_v26 = vcombine.low %v311_v8, %v1980_v9  ;;  %s2256_s15 = scalar_lea.hbm %s2310_s6, %s1577_s20 }
  0x1a   : > { %v1505_v18 = vcombine.low %v347_v11, %v1985_v12  ;;  %v1996_v19 = vld [vmem:[%s1976_s10 + $0xc] sm:$0xf]  ;;  %v1999_v20 = vld [vmem:[%s1976_s10 + $0x10] sm:$0xf]  ;;  %v2002_v21 = vld [vmem:[%s1976_s10 + $0x14] sm:$0xf] }
  0x1b   : > { %v2005_v22 = vld [vmem:[%s1976_s10 + $0x18] sm:$0xf]  ;;  %v2008_v23 = vld [vmem:[%s1976_s10 + $0x1c] sm:$0xf]  ;;  %v1506_v24 = vcombine.low %v1988_v13, %v1996_v19  ;;  %v1507_v25 = vcombine.low %v1999_v20, %v2002_v21  ;;  %v603_v27 = vrot.slane %v329_v14, 1  ;;  %v606_v29 = vrot.slane %v331_v15, 1 }
  0x1c   : > { %1625 = vmatprep.mubr.msk.bf16.mxu0 %vm424_vm1, %v1505_v18  ;;  %v1508_v28 = vcombine.low %v2005_v22, %v2008_v23  ;;  %v314_v30 = vld [vmem:[%s1966_s28 + $0xc] sm:$0x1]  ;;  %v604_v31 = vrot.slane %v330_v16, 1  ;;  %v2021_v32 = vld [vmem:[%s1966_s28 + $0x10] sm:$0xf] }
  0x1d   : > { %1629 = vmatprep.mubr.msk.bf16.mxu1 %vm424_vm1, %v1507_v25  ;;  %1626 = vmatmul.mubr.msk.bf16.vlgmr.msra.gmra.mxu0 %vm424_vm1, %v1506_v24  ;;  %v332_v33 = vunpack.c.l.bf16 %v314_v30  ;;  %v2026_v34 = vld [vmem:[%s1966_s28 + $0x18] sm:$0xf]  ;;  %v333_v35 = vunpack.c.l.bf16 %v2021_v32  ;;  %v316_v36 = vld [vmem:[%s1966_s28 + $0x14] sm:$0x1]  ;;  %v318_v37 = vld [vmem:[%s1966_s28 + $0x1c] sm:$0x1] }
  0x1e   : > { %1630 = vmatmul.mubr.msk.bf16.vlgmr.msra.gmra.mxu1 %vm424_vm1, %v1508_v28  ;;  %1644 = vmatpush3.bf16.msra.mxu0 %v654_v6  ;;  %v605_v38 = vsel %vm602_vm2, %v603_v27, %v604_v31  ;;  %v335_v39 = vunpack.c.l.bf16 %v2026_v34  ;;  %v334_v40 = vunpack.c.l.bf16 %v316_v36  ;;  %v2037_v42 = vld [vmem:[%s1966_s28 + $0x20] sm:$0xf]  ;;  %v2040_v43 = vld [vmem:[%s1966_s28 + $0x28] sm:$0xf]  ;;  %v336_v46 = vunpack.c.l.bf16 %v318_v37  ;;  %v320_v48 = vld [vmem:[%s1966_s28 + $0x24] sm:$0x1] }
  0x1f   : > { %1634 = vmatpush3.bf16.msra.mxu1 %v519_v5  ;;  %1635 = vmatprep.mubr.msk.bf16.mxu1 %vm424_vm1, %v1501_v26  ;;  %v607_v44 = vrot.slane %v332_v33, 1  ;;  %v609_v45 = vrot.slane %v333_v35, 1  ;;  %v337_v47 = vunpack.c.l.bf16 %v2037_v42  ;;  %v322_v49 = vld [vmem:[%s1966_s28 + $0x2c] sm:$0x1]  ;;  %v339_v52 = vunpack.c.l.bf16 %v2040_v43  ;;  %v2050_v53 = vld [vmem:[%s1966_s28 + $0x30] sm:$0xf] }
  0x20   : > { %1719 = vmatprep.subr.msk.bf16.mxu1 %vm437_vm0, %v1527_v4  ;;  %v612_v50 = vrot.slane %v335_v39, 1  ;;  %v610_v51 = vrot.slane %v334_v40, 1  ;;  %1720 = vmatprep.subr.msk.bf16.mxu0 %vm437_vm0, %v1536_v17  ;;  %v2053_v54 = vld [vmem:[%s1966_s28 + $0x38] sm:$0xf]  ;;  %v1502_v56 = vcombine.low %v2021_v32, %v2026_v34  ;;  %v613_v57 = vrot.slane %v336_v46, 1  ;;  %v1781_v37 = vld [vmem:[%s2060_s18] sm:$0xff]  }
  0x21   : > { %v2063_v55 = vsel %vm602_vm2, %v606_v29, %v607_v44  ;;  %v615_v58 = vrot.slane %v337_v47, 1  ;;  %v324_v59 = vld [vmem:[%s1966_s28 + $0x34] sm:$0x1]  ;;  %v618_v62 = vrot.slane %v339_v52, 1  ;;  %v338_v63 = vunpack.c.l.bf16 %v320_v48  ;;  %v326_v0 = vld [vmem:[%s1966_s28 + $0x3c] sm:$0x1] }
  0x22   : > { %v635_v60 = vpack.c.bf16 %v2063_v55, %v605_v38  ;;  %v2070_v61 = vsel %vm602_vm2, %v609_v45, %v610_v51  ;;  %v2074_v1 = vsel %vm602_vm2, %v612_v50, %v613_v57  ;;  %v340_v2 = vunpack.c.l.bf16 %v322_v49  ;;  %v1541_v11 = vld [vmem:[%s2308_s4 + $0xa] sm:$0x3]  ;;  %v1550_v25 = vld [vmem:[%s2308_s4 + $0xc] sm:$0x3]  ;;  %v365_v28 = vld [vmem:[%s2083_s26] sm:$0xf] }
  0x23   : > { %v341_v3 = vunpack.c.l.bf16 %v2050_v53  ;;  %v343_v4 = vunpack.c.l.bf16 %v2053_v54  ;;  %v636_v5 = vpack.c.bf16 %v2074_v1, %v2070_v61  ;;  %v1503_v6 = vcombine.low %v2037_v42, %v2040_v43  ;;  %v367_v31 = vld [vmem:[%s2083_s26 + $0x8] sm:$0xf]  ;;  %v366_v38 = vld [vmem:[%s2083_s26 + $0x4] sm:$0x1]  ;;  %v368_v39 = vld [vmem:[%s2083_s26 + $0xc] sm:$0x1] }
  0x24   : > { %1645 = vmatprep.mubr.msk.bf16.mxu0 %vm424_vm1, %v635_v60  ;;  %v616_v8 = vrot.slane %v338_v63, 1  ;;  %v342_v10 = vunpack.c.l.bf16 %v324_v59  ;;  %v619_v14 = vrot.slane %v340_v2, 1  ;;  %v344_v17 = vunpack.c.l.bf16 %v326_v0  ;;  %v369_v44 = vld [vmem:[%s2083_s26 + $0x10] sm:$0xf]  ;;  %v371_v45 = vld [vmem:[%s2083_s26 + $0x18] sm:$0xf] }
  0x25   : > { %v621_v15 = vrot.slane %v341_v3, 1  ;;  %v624_v16 = vrot.slane %v343_v4, 1  ;;  %1646 = vmatmul.mubr.msk.bf16.vlgmr.msra.gmra.mxu0 %vm424_vm1, %v636_v5  ;;  %v1504_v33 = vcombine.low %v2050_v53, %v2053_v54  ;;  %v1523_v36 = vcombine.low %v365_v28, %v367_v31  ;;  %v373_v48 = vld [vmem:[%s2083_s26 + $0x20] sm:$0xf]  ;;  %v375_v49 = vld [vmem:[%s2083_s26 + $0x28] sm:$0xf] }
  0x26   : > { %1636 = vmatmul.mubr.msk.bf16.vlgmr.msra.gmra.mxu1 %vm424_vm1, %v1502_v56  ;;  %v2096_v18 = vsel %vm602_vm2, %v615_v58, %v616_v8  ;;  %v622_v24 = vrot.slane %v342_v10, 1  ;;  %1664 = vmatpush3.bf16.msra.mxu0 %v842_v41  ;;  %v2103_v26 = vsel %vm602_vm2, %v618_v62, %v619_v14  ;;  %v625_v27 = vrot.slane %v344_v17, 1  ;;  %v2135_v50 = vld [vmem:[%s1976_s10 + $0x20] sm:$0xf]  ;;  %v1783_v52 = vld [vmem:[%s2060_s18 + $0x8] sm:$0xff]   ;;  %v1785_v60 = vld [vmem:[%s2060_s18 + $0x10] sm:$0xff]  }
  0x27   : > { %1654 = vmatpush3.bf16.msra.mxu1 %v1971_v7  ;;  %1639 = vmatprep.mubr.msk.bf16.mxu1 %vm424_vm1, %v1503_v6  ;;  %v637_v29 = vpack.c.bf16 %v2103_v26, %v2096_v18  ;;  %v381_v40 = vunpack.c.l.bf16 %v365_v28  ;;  %v383_v41 = vunpack.c.l.bf16 %v367_v31  ;;  %v382_v46 = vunpack.c.l.bf16 %v366_v38  ;;  %v370_v2 = vld [vmem:[%s2083_s26 + $0x14] sm:$0x1]  ;;  %v372_v3 = vld [vmem:[%s2083_s26 + $0x1c] sm:$0x1]  ;;  %v1559_v5 = vld [vmem:[%s2308_s4 + $0xe] sm:$0x3] }
  0x28   : > { %v2110_v30 = vsel %vm602_vm2, %v621_v15, %v622_v24  ;;  %1721 = vmatprep.subr.msk.bf16.mxu1 %vm437_vm0, %v1541_v11  ;;  %v2115_v7 = vsel %vm602_vm2, %v624_v16, %v625_v27  ;;  %1722 = vmatprep.subr.msk.bf16.mxu0 %vm437_vm0, %v1550_v25  ;;  %v384_v47 = vunpack.c.l.bf16 %v368_v39  ;;  %v1524_v51 = vcombine.low %v369_v44, %v371_v45  ;;  %v1564_v8 = vld [vmem:[%s2308_s4 + $0x10] sm:$0x3]  ;;  %v374_v10 = vld [vmem:[%s2083_s26 + $0x24] sm:$0x1]  ;;  %v379_v16 = vld [vmem:[%s2083_s26 + $0x38] sm:$0xf] }
  0x29   : > { %1649 = vmatprep.mubr.msk.bf16.mxu0 %vm424_vm1, %v637_v29  ;;  %v638_v35 = vpack.c.bf16 %v2115_v7, %v2110_v30  ;;  %v933_v56 = vrot.slane %v381_v40, 1  ;;  %v936_v57 = vrot.slane %v383_v41, 1  ;;  %v984_v58 = vsel %vm437_vm0, %v1541_v11, 0  ;;  %v376_v11 = vld [vmem:[%s2083_s26 + $0x2c] sm:$0x1]  ;;  %s1854_s10 = smov [#allocation2]  }
  0x2a   : > { %v1078_v59 = vsel %vm437_vm0, %v1550_v25, 0  ;;  %v1525_v62 = vcombine.low %v373_v48, %v375_v49  ;;  %v934_v63 = vrot.slane %v382_v46, 1  ;;  %v937_v0 = vrot.slane %v384_v47, 1  ;;  %v377_v15 = vld [vmem:[%s2083_s26 + $0x30] sm:$0xf]  ;;  %s1796_s12 = sshll.u32 %s1854_s10, 4  ;;  %s1797_s12 = int_to_ptr.vmem [resolvable:$false] %s1796_s12 }
  0x2b   : > { %v1558_v4 = vcombine.low %v2008_v23, %v2135_v50  ;;  %v385_v6 = vunpack.c.l.bf16 %v369_v44  ;;  %v387_v14 = vunpack.c.l.bf16 %v371_v45  ;;  %v386_v17 = vunpack.c.l.bf16 %v370_v2  ;;  %v378_v45 = vld [vmem:[%s2083_s26 + $0x34] sm:$0x1]  ;;  %v380_v46 = vld [vmem:[%s2083_s26 + $0x3c] sm:$0x1]  ;;  %s1798_s13 = scalar_lea.vmem %s1797_s12, 2048 }
  0x2c   : > { %v388_v24 = vunpack.c.l.bf16 %v372_v3  ;;  %v935_v25 = vsel %vm602_vm2, %v933_v56, %v934_v63  ;;  %v938_v27 = vsel %vm602_vm2, %v936_v57, %v937_v0  ;;  %v389_v28 = vunpack.c.l.bf16 %v373_v48 }
  0x2d   : > { %1650 = vmatmul.mubr.msk.bf16.gmra.mxu0 %vm424_vm1, %v638_v35  ;;  %v391_v29 = vunpack.c.l.bf16 %v375_v49  ;;  %v390_v31 = vunpack.c.l.bf16 %v374_v10  ;;  %v939_v35 = vrot.slane %v385_v6, 1  ;;  %v1546_v38 = vcombine.low %v1980_v9, %v2021_v32 }
  0x2e   : > { %1640 = vmatmul.mubr.msk.bf16.gmra.mxu1 %vm424_vm1, %v1504_v33  ;;  %1665 = vmatprep.mubr.msk.bf16.mxu0 %vm424_vm1, %v1781_v37  ;;  %v392_v33 = vunpack.c.l.bf16 %v376_v11  ;;  %v1787_v37 = vld [vmem:[%s2060_s18 + $0x18] sm:$0xff]   ;;  %v942_v39 = vrot.slane %v387_v14, 1  ;;  %v965_v40 = vpack.c.bf16 %v938_v27, %v935_v25  ;;  %v940_v41 = vrot.slane %v386_v17, 1  ;;  %v328_v17 = vld [vmem:[%s1966_s28 + $0x44] sm:$0x1] }
  0x2f   : > { %1655 = vmatprep.mubr.msk.bf16.mxu1 %vm424_vm1, %v1523_v36  ;;  %v1526_v36 = vcombine.low %v377_v15, %v379_v16  ;;  %v943_v44 = vrot.slane %v388_v24, 1  ;;  %v945_v47 = vrot.slane %v389_v28, 1  ;;  %v948_v48 = vrot.slane %v391_v29, 1 }
  0x30   : > { %v946_v49 = vrot.slane %v390_v31, 1  ;;  %v395_v56 = vunpack.c.l.bf16 %v379_v16  ;;  %v941_v9 = vsel %vm602_vm2, %v939_v35, %v940_v41  ;;  %v394_v57 = vunpack.c.l.bf16 %v378_v45  ;;  %v327_v16 = vld [vmem:[%s1966_s28 + $0x40] sm:$0xf]  ;;  %s287_s28 = sand.u32 1, %s1844_s22  }
  0x31   : > { %v944_v32 = vsel %vm602_vm2, %v942_v39, %v943_v44  ;;  %v1172_v10 = vsel %vm437_vm0, %v1559_v5, 0  ;;  %v1272_v11 = vsel %vm437_vm0, %v1564_v8, 0  ;;  %v345_v24 = vunpack.c.l.bf16 %v327_v16  ;;  %s1494_s18 = sshll.u32 %s287_s28, 6  ;;  %s2264_s25 = scalar_lea.sflag [#allocation3], %s287_s28 }
  0x32   : > { %v966_v63 = vpack.c.bf16 %v944_v32, %v941_v9  ;;  %v954_v2 = vrot.slane %v395_v56, 1  ;;  %v952_v3 = vrot.slane %v394_v57, 1  ;;  %v346_v25 = vunpack.c.l.bf16 %v328_v17  ;;  %s2237_s19 = scalar_lea.vmem [#allocation2], %s1494_s18 }
  0x33   : > { %s1392_s26 = sshll.u32 %s2237_s19, 4  ;;  %s2258_s26 = int_to_ptr.vmem [resolvable:$true] %s1392_s26 }
  0x34   : > { %v1250_v27 = vrot.slane %v346_v25, 1  ;;  %s1792_s11 = scalar_lea.vmem %s2258_s26, 1024  ;;  %p1799_p0 = scmp.lt.s32.totalorder %s2258_s26, %s1797_s12 }
  0x35   : > { %1666 = vmatmul.mubr.msk.bf16.vlgmr.msra.gmra.mxu0 %vm424_vm1, %v1783_v52  ;;  %v393_v52 = vunpack.c.l.bf16 %v377_v15  ;;  %v1548_v15 = vcombine.low %v2040_v43, %v2050_v53  ;;  %v1555_v43 = vcombine.low %v1985_v12, %v1988_v13  ;;  %v1253_v53 = vpack.c.bf16 %v2070_v61, %v2063_v55  ;;  %p1793_p11 = scmp.ne.s32.totalorder %s2258_s26, %s1792_s11  ;;  %p1800_p1 = scmp.lt.s32.totalorder %s1798_s13, %s1792_s11 }
  0x36   : > { %1656 = vmatmul.mubr.msk.bf16.vlgmr.msra.gmra.mxu1 %vm424_vm1, %v1524_v51  ;;  %1684 = vmatpush3.bf16.msra.mxu0 %v1078_v59  ;;  %v949_v51 = vrot.slane %v392_v33, 1  ;;  %v947_v59 = vsel %vm602_vm2, %v945_v47, %v946_v49  ;;  %v1254_v12 = vpack.c.bf16 %v2096_v18, %v2074_v1  ;;  %v1557_v13 = vcombine.low %v2002_v21, %v2005_v22 }
  0x37   : > { %1674 = vmatpush3.bf16.msra.mxu1 %v984_v58  ;;  %1659 = vmatprep.mubr.msk.bf16.mxu1 %vm424_vm1, %v1525_v62  ;;  %v396_v58 = vunpack.c.l.bf16 %v380_v46  ;;  %v1547_v62 = vcombine.low %v2026_v34, %v2037_v42  ;;  %v951_v0 = vrot.slane %v393_v52, 1  ;;  %v1249_v55 = vrot.slane %v345_v24, 1  ;;  %p1794_p12 = pnand %p1793_p11, %p1930_p5  ;;  %p1801_p2 = por %p1800_p1, %p1799_p0 }
  0x38   : > { %1669 = vmatprep.mubr.msk.bf16.mxu0 %vm424_vm1, %v1785_v60  ;;  %1723 = vmatprep.subr.msk.bf16.mxu1 %vm437_vm0, %v1559_v5  ;;  %v950_v60 = vsel %vm602_vm2, %v948_v48, %v949_v51  ;;  %v1255_v61 = vpack.c.bf16 %v2110_v30, %v2103_v26 }
  0x39   : > { %1724 = vmatprep.subr.msk.bf16.mxu0 %vm437_vm0, %v1564_v8  ;;  %v955_v6 = vrot.slane %v396_v58, 1  ;;  %v967_v14 = vpack.c.bf16 %v950_v60, %v947_v59  ;;  %v953_v34 = vsel %vm602_vm2, %v951_v0, %v952_v3  ;;  %v1549_v8 = vcombine.low %v2053_v54, %v327_v16  ;;  %p1795_p13 = pneg %p1794_p12 }
  0x3a   : > { %v1556_v54 = vcombine.low %v1996_v19, %v1999_v20  ;;  %v1251_v19 = vsel %vm602_vm2, %v1249_v55, %v1250_v27 }
  0x3b   : > { %v956_v42 = vsel %vm602_vm2, %v954_v2, %v955_v6  ;;  %v1256_v20 = vpack.c.bf16 %v1251_v19, %v2115_v7  ;;  %p1802_p3 = pnand %p1801_p2, %p1795_p13 }
  0x3c   : > { %v968_v5 = vpack.c.bf16 %v956_v42, %v953_v34 }
  0x3d   : > { %1670 = vmatmul.mubr.msk.bf16.gmra.mxu0 %vm424_vm1, %v1787_v37 }
  0x3e   : > { %1660 = vmatmul.mubr.msk.bf16.gmra.mxu1 %vm424_vm1, %v1526_v36  ;;  %1685 = vmatprep.mubr.msk.bf16.mxu0 %vm424_vm1, %v1546_v38 }
  0x3f   : > { %1675 = vmatprep.mubr.msk.bf16.mxu1 %vm424_vm1, %v965_v40 }
  0x45   : > { %1686 = vmatmul.mubr.msk.bf16.vlgmr.msra.gmra.mxu0 %vm424_vm1, %v1547_v62 }
  0x46   : > { %1676 = vmatmul.mubr.msk.bf16.vlgmr.msra.gmra.mxu1 %vm424_vm1, %v966_v63  ;;  %1704 = vmatpush3.bf16.msra.mxu0 %v1272_v11 }
  0x47   : > { %1694 = vmatpush3.bf16.msra.mxu1 %v1172_v10  ;;  %1679 = vmatprep.mubr.msk.bf16.mxu1 %vm424_vm1, %v967_v14 }
  0x48   : > { %1689 = vmatprep.mubr.msk.bf16.mxu0 %vm424_vm1, %v1548_v15 }
  0x4d   : > { %1690 = vmatmul.mubr.msk.bf16.gmra.mxu0 %vm424_vm1, %v1549_v8 }
  0x4e   : > { %1680 = vmatmul.mubr.msk.bf16.gmra.mxu1 %vm424_vm1, %v968_v5  ;;  %1705 = vmatprep.mubr.msk.bf16.mxu0 %vm424_vm1, %v1253_v53 }
  0x4f   : > { %1695 = vmatprep.mubr.msk.bf16.mxu1 %vm424_vm1, %v1555_v43 }
  0x55   : > { %1706 = vmatmul.mubr.msk.bf16.vlgmr.msra.gmra.mxu0 %vm424_vm1, %v1254_v12 }
  0x56   : > { %1696 = vmatmul.mubr.msk.bf16.vlgmr.msra.gmra.mxu1 %vm424_vm1, %v1556_v54  ;;  %1709 = vmatprep.mubr.msk.bf16.mxu0 %vm424_vm1, %v1255_v61 }
  0x57   : > { %1699 = vmatprep.mubr.msk.bf16.mxu1 %vm424_vm1, %v1557_v13 }
  0x5d   : > { %1710 = vmatmul.mubr.msk.bf16.gmra.mxu0 %vm424_vm1, %v1256_v20 }
  0x5e   : > { %1700 = vmatmul.mubr.msk.bf16.gmra.mxu1 %vm424_vm1, %v1558_v4 }
  0xdd   : > { %v1627_v21 = vpop.f32.mrf.mxu0 }
  0xde   : > { %v1631_v22 = vpop.f32.mrf.mxu1 }
  0xdf   : > { %v475_v1 = vpop.f32.mrf.mxu0 }
  0xe0   : > { %v491_v18 = vpop.f32.mrf.mxu1 }
  0xe1   : > { %v1628_v26 = vpop.f32.mrf.mxu0 }
  0xe2   : > { %v1632_v30 = vpop.f32.mrf.mxu1 }
  0xe3   : > { %v478_v28 = vpop.f32.mrf.mxu0 }
  0xe4   : > { %v2218_v29 = vpop.f32.mrf.mxu1 }
  0xe5   : > { %v1647_v33 = vpop.f32.mrf.mxu0 }
  0xe6   : > { %v1637_v31 = vpop.f32.mrf.mxu1 }
  0xe7   : > { %v690_v7 = vpop.f32.mrf.mxu0  ;;  %v564_v3 = vadd.f32 %v1637_v31, %v1627_v21 }
  0xe8   : > { %v555_v35 = vpop.f32.mrf.mxu1 }
  0xe9   : > { %v1648_v37 = vpop.f32.mrf.mxu0  ;;  %v556_v11 = vadd.f32 %v555_v35, %v475_v1  ;;  %v723_v34 = vadd.f32 %v1647_v33, %v564_v3 }
  0xea   : > { %v1638_v36 = vpop.f32.mrf.mxu1 }
  0xeb   : > { %v693_v50 = vpop.f32.mrf.mxu0  ;;  %v567_v42 = vadd.f32 %v1638_v36, %v1628_v26  ;;  %v721_v8 = vadd.f32 %v690_v7, %v556_v11 }
  0xec   : > { %v558_v23 = vpop.f32.mrf.mxu1 }
  0xed   : > { %v1651_v38 = vpop.f32.mrf.mxu0  ;;  %v559_v43 = vadd.f32 %v558_v23, %v478_v28  ;;  %v724_v54 = vadd.f32 %v1648_v37, %v567_v42 }
  0xee   : > { %v1641_v4 = vpop.f32.mrf.mxu1 }
  0xef   : > { %v706_v40 = vpop.f32.mrf.mxu0  ;;  %v580_v17 = vadd.f32 %v1641_v4, %v1631_v22  ;;  %v722_v27 = vadd.f32 %v693_v50, %v559_v43 }
  0xf0   : > { %v571_v39 = vpop.f32.mrf.mxu1 }
  0xf1   : > { %v1652_v44 = vpop.f32.mrf.mxu0  ;;  %v572_v13 = vadd.f32 %v571_v39, %v491_v18  ;;  %v727_v21 = vadd.f32 %v1651_v38, %v580_v17 }
  0xf2   : > { %v1642_v41 = vpop.f32.mrf.mxu1 }
  0xf3   : > { %v709_v46 = vpop.f32.mrf.mxu0  ;;  %v583_v1 = vadd.f32 %v1642_v41, %v1632_v30  ;;  %v725_v28 = vadd.f32 %v706_v40, %v572_v13 }
  0xf4   : > { %v574_v45 = vpop.f32.mrf.mxu1 }
  0xf5   : > { %v1667_v48 = vpop.f32.mrf.mxu0  ;;  %v575_v22 = vadd.f32 %v574_v45, %v2218_v29  ;;  %v728_v39 = vadd.f32 %v1652_v44, %v583_v1  ;;  %v2229_v44 = vld [vmem:[%s2309_s5] ss:$0 sm:$0xff] }
  0xf6   : > { %v1657_v47 = vpop.f32.mrf.mxu1 }
  0xf7   : > { %v878_v51 = vpop.f32.mrf.mxu0  ;;  %v817_v53 = vadd.f32 %v1657_v47, %v723_v34 }
  0xf8   : > { %v784_v49 = vpop.f32.mrf.mxu1 }
  0xf9   : > { %v1668_v56 = vpop.f32.mrf.mxu0  ;;  %v815_v12 = vadd.f32 %v784_v49, %v721_v8  ;;  %v911_v19 = vadd.f32 %v1667_v48, %v817_v53  ;;  %v726_v49 = vadd.f32 %v709_v46, %v575_v22 }
  0xfa   : > { %v1658_v52 = vpop.f32.mrf.mxu1 }
  0xfb   : > { %v881_v32 = vpop.f32.mrf.mxu0  ;;  %v818_v20 = vadd.f32 %v1658_v52, %v724_v54  ;;  %v909_v33 = vadd.f32 %v878_v51, %v815_v12 }
  0xfc   : > { %v787_v9 = vpop.f32.mrf.mxu1 }
  0xfd   : > { %v1671_v58 = vpop.f32.mrf.mxu0  ;;  %v816_v35 = vadd.f32 %v787_v9, %v722_v27  ;;  %v912_v18 = vadd.f32 %v1668_v56, %v818_v20 }
  0xfe   : > { %v1661_v57 = vpop.f32.mrf.mxu1 }
  0xff   : > { %v894_v60 = vpop.f32.mrf.mxu0  ;;  %v821_v36 = vadd.f32 %v1661_v57, %v727_v21  ;;  %v910_v38 = vadd.f32 %v881_v32, %v816_v35 }
 0x100   : > { %v800_v59 = vpop.f32.mrf.mxu1 }
 0x101   : > { %v2220_v63 = vpop.f32.mrf.mxu0  ;;  %v819_v50 = vadd.f32 %v800_v59, %v725_v28  ;;  %v915_v51 = vadd.f32 %v1671_v58, %v821_v36 }
 0x102   : > { %v1662_v62 = vpop.f32.mrf.mxu1 }
 0x103   : > { %v2222_v2 = vpop.f32.mrf.mxu0  ;;  %v822_v52 = vadd.f32 %v1662_v62, %v728_v39  ;;  %v913_v3 = vadd.f32 %v894_v60, %v819_v50 }
 0x104   : > { %v803_v0 = vpop.f32.mrf.mxu1 }
 0x105   : > { %v1687_v10 = vpop.f32.mrf.mxu0  ;;  %v820_v56 = vadd.f32 %v803_v0, %v726_v49 }
 0x106   : > { %v1677_v6 = vpop.f32.mrf.mxu1 }
 0x107   : > { %v1114_v15 = vpop.f32.mrf.mxu0  ;;  %v1053_v7 = vadd.f32 %v1677_v6, %v911_v19 }
 0x108   : > { %v1020_v14 = vpop.f32.mrf.mxu1 }
 0x109   : > { %v1688_v5 = vpop.f32.mrf.mxu0  ;;  %v1051_v4 = vadd.f32 %v1020_v14, %v909_v33  ;;  %v1147_v30 = vadd.f32 %v1687_v10, %v1053_v7  ;;  %v916_v10 = vadd.f32 %v2220_v63, %v822_v52 }
 0x10a   : > { %v1678_v16 = vpop.f32.mrf.mxu1 }
 0x10b   : > { %v1117_v25 = vpop.f32.mrf.mxu0  ;;  %v1054_v41 = vadd.f32 %v1678_v16, %v912_v18  ;;  %v1145_v45 = vadd.f32 %v1114_v15, %v1051_v4  ;;  %v914_v16 = vadd.f32 %v2222_v2, %v820_v56 }
 0x10c   : > { %v1023_v24 = vpop.f32.mrf.mxu1 }
 0x10d   : > { %v1691_v61 = vpop.f32.mrf.mxu0  ;;  %v1052_v9 = vadd.f32 %v1023_v24, %v910_v38  ;;  %v1148_v46 = vadd.f32 %v1688_v5, %v1054_v41 }
 0x10e   : > { %v1681_v55 = vpop.f32.mrf.mxu1 }
 0x10f   : > { %v1130_v26 = vpop.f32.mrf.mxu0  ;;  %v1057_v6 = vadd.f32 %v1681_v55, %v915_v51  ;;  %v1146_v60 = vadd.f32 %v1117_v25, %v1052_v9 }
 0x110   : > { %v1036_v31 = vpop.f32.mrf.mxu1 }
 0x111   : > { %v1692_v23 = vpop.f32.mrf.mxu0  ;;  %v1055_v11 = vadd.f32 %v1036_v31, %v913_v3  ;;  %v1151_v8 = vadd.f32 %v1691_v61, %v1057_v6 }
 0x112   : > { %v1682_v37 = vpop.f32.mrf.mxu1 }
 0x113   : > { %v1133_v48 = vpop.f32.mrf.mxu0  ;;  %v1058_v43 = vadd.f32 %v1682_v37, %v916_v10  ;;  %v1149_v63 = vadd.f32 %v1130_v26, %v1055_v11 }
 0x114   : > { %v1039_v47 = vpop.f32.mrf.mxu1 }
 0x115   : > { %v1707_v29 = vpop.f32.mrf.mxu0  ;;  %v1056_v13 = vadd.f32 %v1039_v47, %v914_v16  ;;  %v1152_v20 = vadd.f32 %v1692_v23, %v1058_v43 }
 0x116   : > { %v1697_v40 = vpop.f32.mrf.mxu1 }
 0x117   : > { %v1241_v57 = vadd.f32 %v1697_v40, %v1147_v30  ;;  %v1308_v59 = vpop.f32.mrf.mxu0  ;;  %v1150_v7 = vadd.f32 %v1133_v48, %v1056_v13 }
 0x118   : > { %v1208_v32 = vpop.f32.mrf.mxu1 }
 0x119   : > { %v1341_v58 = vadd.f32 %v1707_v29, %v1241_v57  ;;  %v1239_v62 = vadd.f32 %v1208_v32, %v1145_v45  ;;  %v1708_v15 = vpop.f32.mrf.mxu0 }
 0x11a   : > { %v1698_v14 = vpop.f32.mrf.mxu1 }
 0x11b   : > { %v1356_v0 = vadd.f32 %v2229_v44, %v1341_v58  ;;  %v1339_v34 = vadd.f32 %v1308_v59, %v1239_v62  ;;  %v1242_v42 = vadd.f32 %v1698_v14, %v1148_v46  ;;  %v1311_v5 = vpop.f32.mrf.mxu0 }
 0x11c   : > { %v1211_v53 = vpop.f32.mrf.mxu1 }
 0x11d   : > { %v1364_v17 = vmax.f32 %v1356_v0, 0.0  ;;  %v1354_v24 = vadd.f32 %v2229_v44, %v1339_v34  ;;  %v1342_v54 = vadd.f32 %v1708_v15, %v1242_v42  ;;  %v1240_v12 = vadd.f32 %v1211_v53, %v1146_v60  ;;  %v1711_v27 = vpop.f32.mrf.mxu0 }
 0x11e   : > { %v1701_v55 = vpop.f32.mrf.mxu1 }
 0x11f   : > { %1372 = vst [vmem:[%s2237_s19 + $0x10] sm:$0xff] %v1364_v17  ;;  %v1362_v2 = vmax.f32 %v1354_v24, 0.0  ;;  %v1357_v25 = vadd.f32 %v2229_v44, %v1342_v54  ;;  %v1340_v61 = vadd.f32 %v1311_v5, %v1240_v12  ;;  %v1245_v19 = vadd.f32 %v1701_v55, %v1151_v8  ;;  %v1324_v1 = vpop.f32.mrf.mxu0 }
 0x120   : > { %v1224_v21 = vpop.f32.mrf.mxu1 }
 0x121   : > { %1370 = vst [vmem:[%s2237_s19] sm:$0xff] %v1362_v2  ;;  %v1365_v31 = vmax.f32 %v1357_v25, 0.0  ;;  %v1355_v26 = vadd.f32 %v2229_v44, %v1340_v61  ;;  %v1345_v33 = vadd.f32 %v1711_v27, %v1245_v19  ;;  %v1243_v35 = vadd.f32 %v1224_v21, %v1149_v63  ;;  %v1712_v22 = vpop.f32.mrf.mxu0 }
 0x122   : > { %v1702_v28 = vpop.f32.mrf.mxu1 }
 0x123   : > { %1373 = vst [vmem:[%s2237_s19 + $0x18] sm:$0xff] %v1365_v31  ;;  %v1363_v36 = vmax.f32 %v1355_v26, 0.0  ;;  %v1360_v37 = vadd.f32 %v2229_v44, %v1345_v33  ;;  %v1343_v23 = vadd.f32 %v1324_v1, %v1243_v35  ;;  %v1246_v18 = vadd.f32 %v1702_v28, %v1152_v20  ;;  %v1327_v38 = vpop.f32.mrf.mxu0 }
 0x124   : > { %v1227_v4 = vpop.f32.mrf.mxu1 }
 0x125   : > { %1371 = vst [vmem:[%s2237_s19 + $0x8] sm:$0xff] %v1363_v36  ;;  %v1368_v39 = vmax.f32 %v1360_v37, 0.0  ;;  %v1358_v50 = vadd.f32 %v2229_v44, %v1343_v23  ;;  %v1346_v47 = vadd.f32 %v1712_v22, %v1246_v18  ;;  %v1244_v48 = vadd.f32 %v1227_v4, %v1150_v7 }
 0x127   : > { %1376 = vst [vmem:[%s2237_s19 + $0x30] sm:$0xff] %v1368_v39  ;;  %v1366_v30 = vmax.f32 %v1358_v50, 0.0  ;;  %v1361_v41 = vadd.f32 %v2229_v44, %v1346_v47  ;;  %v1344_v49 = vadd.f32 %v1327_v38, %v1244_v48 }
 0x129   : > { %1374 = vst [vmem:[%s2237_s19 + $0x20] sm:$0xff] %v1366_v30  ;;  %v1369_v51 = vmax.f32 %v1361_v41, 0.0  ;;  %v1359_v52 = vadd.f32 %v2229_v44, %v1344_v49 }
 0x12b   : > { %1377 = vst [vmem:[%s2237_s19 + $0x38] sm:$0xff] %v1369_v51  ;;  %v1367_v40 = vmax.f32 %v1359_v52, 0.0 }
 0x12d   : > { %1375 = vst [vmem:[%s2237_s19 + $0x28] sm:$0xff] %v1367_v40 }
 0x12e   : > { %1805 = shalt.err (!%p1802_p3)
}
 0x12f   : > { %s1806_s14 = scalar_lea.hbm %s2256_s15, 1024  ;;  %s1810_s17 = scalar_lea.hbm %s2310_s6, 2048 }
 0x130   : > { %p1807_p4 = scmp.ne.s32.totalorder %s2256_s15, %s1806_s14  ;;  %p1811_p9 = scmp.lt.s32.totalorder %s2256_s15, %s2310_s6 }
 0x131   : > { %p1812_p10 = scmp.lt.s32.totalorder %s1810_s17, %s1806_s14 }
 0x132   : > { %p1808_p7 = pnand %p1807_p4, %p1930_p5 }
 0x133   : > { %p1813_p11 = por %p1812_p10, %p1811_p9 }
 0x134   : > { %p1809_p8 = pneg %p1808_p7 }
 0x136   : > { %p1814_p12 = pnand %p1813_p11, %p1809_p8 }
 0x138   : > { %1817 = shalt.err (!%p1814_p12)
}
 0x139   : > { %s1855_s20 = smov 128   ;;  %s1856_s29 = smov 8  }
 0x13a   : > { %1727 = dma.vmem_to_hbm [thread:$0]  (%p1930_p5), %s2258_s26, 1024, %s2256_s15, %s2264_s25, %s1855_s20, %s1855_s20, %s1856_s29  }
 0x13b PF: > { %p1733_p13 = scmp.ge.s32.totalorder %s1852_s24, 2  ;;  %s1407_s9 = sand.u32 1, %s1840_s21  }
 0x13c   : > { %s1408_s11 = scalar_lea.sflag [#allocation3], %s1407_s9 }
 0x13d   : > { %p1730_p0 = pnand %p1733_p13, %p1934_p6 }
 0x13f   : > { %p1731_p1 = pneg %p1730_p0 }
 0x141   : > { %1835 = dma.done.wait (%p1731_p1), %s1408_s11, 1024  }
 0x142   : > { %1837 = vsyncadd (%p1731_p1), %s1408_s11, 4294966272  ;;  %p16_p2 = scmp.ge.s32.totalorder %s1917_s27, 4   ;;  %s2313_s21 = smov %s1844_s22 }
 0x143   : > { %s2314_s22 = smov %s1848_s23  ;;  %s2315_s23 = smov %s1928_s30 }
 0x144   : > { %s2316_s24 = smov %s1917_s27  ;;  %18 = sbr.rel (!%p16_p2) target bundleno = 3 (0x3), region = 96 }
 0x149   :  { %1413 = vsyncpa [#allocation3], 1 }
 0x14a   :  { %1415 = vsyncpa [#allocation3 + $0x1], 1 }

</bundles_post_ra>
